<compile_context>
chip_gen: v5e
topology: v5e:2x2
jax: 0.10.0
libtpu: 0.0.40
codegen_flags: <defaults>
</compile_context>

<pallas_src>
import jax
import jax.numpy as jnp
from jax.experimental import pallas as pl
from jax.experimental.pallas import tpu as pltpu

# Hopper-v3 dimensions (gym not required at kernel-build time).
NS = 11            # observation dim
NA = 3             # action dim
HIDDEN = 256
K_IN = NS + NA     # 14
K_PAD = 16         # fc1 contraction dim zero-padded to a multiple of 8


def _round_up(n, m):
    return ((n + m - 1) // m) * m


def critic_kernel(xa_ref, w1_ref, b1_ref, w2_ref, b2_ref, w3_ref, b3_ref, o_ref):
    # fc1: single bf16 MXU dot against the zero-padded (16,256) weight,
    # f32 accumulate; bias + relu in f32 on the VPU, result stored as bf16
    # (it is the fc2 MXU input and this halves the (TB,256) intermediate).
    xa = xa_ref[...].astype(jnp.bfloat16)                    # (TB, 16)
    h1 = jnp.dot(xa, w1_ref[...], preferred_element_type=jnp.float32)
    h1 = jnp.maximum(h1 + b1_ref[...], 0.0).astype(jnp.bfloat16)

    # fc2 + relu (f32 accumulate / f32 VPU arithmetic — safe on v5e too).
    h2 = jnp.dot(h1, w2_ref[...], preferred_element_type=jnp.float32)
    h2 = jnp.maximum(h2 + b2_ref[...], 0.0)

    # fc3 as a VPU multiply + lane reduction against the (1, 256) weight row
    # instead of a (TB,256)x(256,1) MXU matmul lighting <1% of the MXU columns.
    w3 = w3_ref[...].astype(jnp.float32)                     # (1, HIDDEN)
    q = jnp.sum(h2 * w3, axis=-1, keepdims=True) + b3_ref[...]
    o_ref[...] = q.astype(o_ref.dtype)


def critic_forward(x, a, params, *, tb=2048):
    """x: (B, NS) f32, a: (B, NA) f32. Returns q: (B,) f32 (matches reshape([-1]))."""
    B = x.shape[0]
    w1, b1, w2, b2, w3, b3 = params

    # Tile selection:
    #  * n_tiles = cdiv(B, tb) keeps per-tile padding <= 8 rows per tile.
    #  * For B >= 1024 force an even number of >= 2 tiles so the "parallel"
    #    batch axis shards across both TensorCores on v7x.
    n_tiles = max(1, pl.cdiv(B, tb))
    if B >= 1024:
        n_tiles = max(n_tiles, 2)
        n_tiles += n_tiles % 2          # even -> balanced across 2 TCs
    TB = _round_up(pl.cdiv(B, n_tiles), 8)
    B_pad = n_tiles * TB

    # Pack x|a once where the batch is assembled (single (B_pad, 16) stream);
    # ghost rows / ghost columns are zeros and flow through bias/relu harmlessly.
    xa = jnp.concatenate([x, a], axis=1)                     # (B, 14)
    xa = jnp.pad(xa, ((0, B_pad - B), (0, K_PAD - K_IN)))    # (B_pad, 16)

    # Advisory cost so XLA schedules around this small kernel.
    flops = 2 * B_pad * (K_PAD * HIDDEN + HIDDEN * HIDDEN + HIDDEN)
    bytes_accessed = (
        xa.size * xa.dtype.itemsize
        + sum(int(p.size) * p.dtype.itemsize for p in params)
        + B_pad * 4)
    cost = pl.CostEstimate(flops=flops, transcendentals=0,
                           bytes_accessed=bytes_accessed)

    tile_spec = lambda shape: pl.BlockSpec(shape, lambda i: (i, 0))
    const_spec = lambda shape: pl.BlockSpec(shape, lambda i: (0, 0))

    q = pl.pallas_call(
        critic_kernel,
        out_shape=jax.ShapeDtypeStruct((B_pad, 1), jnp.float32),
        grid=(n_tiles,),
        in_specs=[
            tile_spec((TB, K_PAD)),      # packed x|a tile
            const_spec(w1.shape),        # weights/biases: VMEM-resident blocks
            const_spec(b1.shape),
            const_spec(w2.shape),
            const_spec(b2.shape),
            const_spec(w3.shape),
            const_spec(b3.shape),
        ],
        out_specs=tile_spec((TB, 1)),
        compiler_params=pltpu.CompilerParams(
            dimension_semantics=("parallel",),
        ),
        cost_estimate=cost,
    )(xa, w1, b1, w2, b2, w3, b3)

    return q[:B].reshape([-1])


def init_params(key):
    """Deterministic init mirroring nn.Linear defaults: U(-1/sqrt(fan_in), +1/sqrt(fan_in)).
    Weights stored transposed vs. PyTorch, i.e. (in, out), in bfloat16; fc1's
    weight is zero-padded from (14,256) to (16,256). Biases stay f32."""
    def linear(k, fan_in, fan_out):
        kw, kb = jax.random.split(k)
        bound = 1.0 / jnp.sqrt(fan_in)
        w = jax.random.uniform(kw, (fan_in, fan_out), jnp.float32, -bound, bound)
        b = jax.random.uniform(kb, (1, fan_out), jnp.float32, -bound, bound)
        return w, b

    k1, k2, k3 = jax.random.split(key, 3)
    w1, b1 = linear(k1, K_IN, HIDDEN)
    w2, b2 = linear(k2, HIDDEN, HIDDEN)
    w3, b3 = linear(k3, HIDDEN, 1)

    w1p = jnp.zeros((K_PAD, HIDDEN), jnp.float32).at[:K_IN].set(w1)
    w1p = w1p.astype(jnp.bfloat16)                 # zero-padded merged fc1 weight
    w2b = w2.astype(jnp.bfloat16)
    w3_row = w3.reshape(1, HIDDEN).astype(jnp.bfloat16)   # fc3 weight as (1,256) row
    # fc4/fc5/fc6 exist in __init__ but are unused by forward(); omitted.
    return (w1p, b1, w2b, b2, w3_row, b3)


if __name__ == "__main__":
    key = jax.random.PRNGKey(0)
    kp, kx, ka = jax.random.split(key, 3)

    params = init_params(kp)

    B = 8
    x = jax.random.normal(kx, (B, NS), jnp.float32)   # observations
    a = jax.random.normal(ka, (B, NA), jnp.float32)   # actions

    q = critic_forward(x, a, params)
    jax.block_until_ready(q)

    # Pure-JAX reference of the same (bf16-weight, f32-accumulate) math.
    w1p, b1, w2, b2, w3, b3 = params
    xa = jnp.pad(jnp.concatenate([x, a], axis=1), ((0, 0), (0, K_PAD - K_IN)))
    h1 = jnp.maximum(
        jnp.dot(xa.astype(jnp.bfloat16), w1p, preferred_element_type=jnp.float32) + b1,
        0.0)
    h2 = jnp.maximum(
        jnp.dot(h1.astype(jnp.bfloat16), w2, preferred_element_type=jnp.float32) + b2,
        0.0)
    ref = (jnp.sum(h2 * w3.astype(jnp.float32), axis=-1, keepdims=True)
           + b3).reshape([-1])

    assert q.shape == (B,)
    assert jnp.allclose(q, ref, atol=5e-3, rtol=5e-3)

    print("KERNEL_OK")
</pallas_src>

<mosaic_0001>
module attributes {stable_mosaic.version = 11 : i64} {
  func.func @critic_kernel(%arg0: i32, %arg1: memref<8x16xf32, #tpu.memory_space<vmem>>, %arg2: memref<16x256xbf16, #tpu.memory_space<vmem>>, %arg3: memref<1x256xf32, #tpu.memory_space<vmem>>, %arg4: memref<256x256xbf16, #tpu.memory_space<vmem>>, %arg5: memref<1x256xf32, #tpu.memory_space<vmem>>, %arg6: memref<1x256xbf16, #tpu.memory_space<vmem>>, %arg7: memref<1x1xf32, #tpu.memory_space<vmem>>, %arg8: memref<8x1xf32, #tpu.memory_space<vmem>>) attributes {dimension_semantics = [#tpu.dimension_semantics<parallel>], iteration_bounds = array<i64: 1>, scalar_prefetch = 0 : i64, scratch_operands = 0 : i64, tpu.core_type = #tpu.core_type<tc>, window_params = [{transform_indices = @transform_0, window_bounds = array<i64: 8, 16>}, {pipeline_mode = #tpu.pipeline_mode<synchronous>, transform_indices = @transform_1, window_bounds = array<i64: 16, 256>}, {pipeline_mode = #tpu.pipeline_mode<synchronous>, transform_indices = @transform_2, window_bounds = array<i64: 1, 256>}, {pipeline_mode = #tpu.pipeline_mode<synchronous>, transform_indices = @transform_3, window_bounds = array<i64: 256, 256>}, {pipeline_mode = #tpu.pipeline_mode<synchronous>, transform_indices = @transform_4, window_bounds = array<i64: 1, 256>}, {pipeline_mode = #tpu.pipeline_mode<synchronous>, transform_indices = @transform_5, window_bounds = array<i64: 1, 256>}, {pipeline_mode = #tpu.pipeline_mode<synchronous>, transform_indices = @transform_6, window_bounds = array<i64: 1, 1>}, {transform_indices = @transform_7, window_bounds = array<i64: 8, 1>}]} {
    %c0 = arith.constant 0 : index
    %c0_0 = arith.constant 0 : index
    %0 = vector.load %arg1[%c0, %c0_0] : memref<8x16xf32, #tpu.memory_space<vmem>>, vector<8x16xf32>
    %1 = arith.truncf %0 : vector<8x16xf32> to vector<8x16xbf16>
    %c0_1 = arith.constant 0 : index
    %c0_2 = arith.constant 0 : index
    %2 = vector.load %arg2[%c0_1, %c0_2] : memref<16x256xbf16, #tpu.memory_space<vmem>>, vector<16x256xbf16>
    %cst = arith.constant dense<0.000000e+00> : vector<8x256xf32>
    %3 = tpu.matmul %1, %2, %cst {dimension_numbers = #tpu.dot_dimension_numbers<[1], [0], [0], [1], [0, 0, 1, 1], [], []>} : vector<8x16xbf16>, vector<16x256xbf16>, vector<8x256xf32> -> vector<8x256xf32>
    %c0_3 = arith.constant 0 : index
    %c0_4 = arith.constant 0 : index
    %4 = vector.load %arg3[%c0_3, %c0_4] : memref<1x256xf32, #tpu.memory_space<vmem>>, vector<1x256xf32>
    %5 = vector.broadcast %4 : vector<1x256xf32> to vector<8x256xf32>
    %6 = arith.addf %3, %5 : vector<8x256xf32>
    %cst_5 = arith.constant 0.000000e+00 : f32
    %7 = vector.broadcast %cst_5 : f32 to vector<8x256xf32>
    %8 = arith.maximumf %6, %7 : vector<8x256xf32>
    %9 = arith.truncf %8 : vector<8x256xf32> to vector<8x256xbf16>
    %c0_6 = arith.constant 0 : index
    %c0_7 = arith.constant 0 : index
    %10 = vector.load %arg4[%c0_6, %c0_7] : memref<256x256xbf16, #tpu.memory_space<vmem>>, vector<256x256xbf16>
    %cst_8 = arith.constant dense<0.000000e+00> : vector<8x256xf32>
    %11 = tpu.matmul %9, %10, %cst_8 {dimension_numbers = #tpu.dot_dimension_numbers<[1], [0], [0], [1], [0, 0, 1, 1], [], []>} : vector<8x256xbf16>, vector<256x256xbf16>, vector<8x256xf32> -> vector<8x256xf32>
    %c0_9 = arith.constant 0 : index
    %c0_10 = arith.constant 0 : index
    %12 = vector.load %arg5[%c0_9, %c0_10] : memref<1x256xf32, #tpu.memory_space<vmem>>, vector<1x256xf32>
    %13 = vector.broadcast %12 : vector<1x256xf32> to vector<8x256xf32>
    %14 = arith.addf %11, %13 : vector<8x256xf32>
    %cst_11 = arith.constant 0.000000e+00 : f32
    %15 = vector.broadcast %cst_11 : f32 to vector<8x256xf32>
    %16 = arith.maximumf %14, %15 : vector<8x256xf32>
    %c0_12 = arith.constant 0 : index
    %c0_13 = arith.constant 0 : index
    %17 = vector.load %arg6[%c0_12, %c0_13] : memref<1x256xbf16, #tpu.memory_space<vmem>>, vector<1x256xbf16>
    %18 = arith.extf %17 : vector<1x256xbf16> to vector<1x256xf32>
    %19 = vector.broadcast %18 : vector<1x256xf32> to vector<8x256xf32>
    %20 = arith.mulf %16, %19 : vector<8x256xf32>
    %cst_14 = arith.constant dense<0.000000e+00> : vector<8xf32>
    %21 = vector.multi_reduction <add>, %20, %cst_14 [1] : vector<8x256xf32> to vector<8xf32>
    %22 = vector.shape_cast %21 : vector<8xf32> to vector<8x1xf32>
    %c0_15 = arith.constant 0 : index
    %c0_16 = arith.constant 0 : index
    %23 = vector.load %arg7[%c0_15, %c0_16] : memref<1x1xf32, #tpu.memory_space<vmem>>, vector<1x1xf32>
    %24 = vector.broadcast %23 : vector<1x1xf32> to vector<8x1xf32>
    %25 = arith.addf %22, %24 : vector<8x1xf32>
    %c0_17 = arith.constant 0 : index
    %c0_18 = arith.constant 0 : index
    %26 = vector.load %arg8[%c0_17, %c0_18] : memref<8x1xf32, #tpu.memory_space<vmem>>, vector<8x1xf32>
    tpu.vector_store %arg8[%c0_17, %c0_18], %25 {strides = array<i32>} : memref<8x1xf32, #tpu.memory_space<vmem>>, vector<8x1xf32>,
    return
  }
  func.func @transform_0(%arg0: i32) -> (i32, i32) {
    %c0_i32 = arith.constant 0 : i32
    %c0_i32_0 = arith.constant 0 : i32
    return %arg0, %c0_i32 : i32, i32
  }
  func.func @transform_1(%arg0: i32) -> (i32, i32) {
    %c0_i32 = arith.constant 0 : i32
    %c0_i32_0 = arith.constant 0 : i32
    %c0_i32_1 = arith.constant 0 : i32
    return %c0_i32, %c0_i32_0 : i32, i32
  }
  func.func @transform_2(%arg0: i32) -> (i32, i32) {
    %c0_i32 = arith.constant 0 : i32
    %c0_i32_0 = arith.constant 0 : i32
    %c0_i32_1 = arith.constant 0 : i32
    return %c0_i32, %c0_i32_0 : i32, i32
  }
  func.func @transform_3(%arg0: i32) -> (i32, i32) {
    %c0_i32 = arith.constant 0 : i32
    %c0_i32_0 = arith.constant 0 : i32
    %c0_i32_1 = arith.constant 0 : i32
    return %c0_i32, %c0_i32_0 : i32, i32
  }
  func.func @transform_4(%arg0: i32) -> (i32, i32) {
    %c0_i32 = arith.constant 0 : i32
    %c0_i32_0 = arith.constant 0 : i32
    %c0_i32_1 = arith.constant 0 : i32
    return %c0_i32, %c0_i32_0 : i32, i32
  }
  func.func @transform_5(%arg0: i32) -> (i32, i32) {
    %c0_i32 = arith.constant 0 : i32
    %c0_i32_0 = arith.constant 0 : i32
    %c0_i32_1 = arith.constant 0 : i32
    return %c0_i32, %c0_i32_0 : i32, i32
  }
  func.func @transform_6(%arg0: i32) -> (i32, i32) {
    %c0_i32 = arith.constant 0 : i32
    %c0_i32_0 = arith.constant 0 : i32
    %c0_i32_1 = arith.constant 0 : i32
    return %c0_i32, %c0_i32_0 : i32, i32
  }
  func.func @transform_7(%arg0: i32) -> (i32, i32) {
    %c0_i32 = arith.constant 0 : i32
    %c0_i32_0 = arith.constant 0 : i32
    return %arg0, %c0_i32 : i32, i32
  }
}

</mosaic_0001>

<bundles_post_ra>
// kernel: tpu_custom_call.1
= control target key start
LH: loop header
LB: loop body
LE: loop exit
PB: predicated region body
PF: predicated region fallthrough
CT: control target
= control target key end

     0   :  { %s732_s0 = inlined_call_operand.hbm [shape: f32[8,16], index: 0, kind: input, shape index: {}]   ;;  %s733_s1 = inlined_call_operand.hbm [shape: bf16[16,256], index: 1, kind: input, shape index: {}]   ;;  %s734_s2 = inlined_call_operand.vmem [shape: f32[1,256], index: 2, kind: input, shape index: {}]   ;;  %s735_s3 = inlined_call_operand.hbm [shape: bf16[256,256], index: 3, kind: input, shape index: {}]   ;;  %s736_s4 = inlined_call_operand.vmem [shape: f32[1,256], index: 4, kind: input, shape index: {}]   ;;  %s737_s5 = inlined_call_operand.vmem [shape: bf16[1,256], index: 5, kind: input, shape index: {}]   ;;  %s738_s6 = inlined_call_operand.<no memory space> [shape: f32[1,1], index: 6, kind: input, shape index: {}]   ;;  %s739_s7 = inlined_call_operand.vmem [shape: f32[8,1], index: 7, kind: output, shape index: {}]  }
   0x1   :  { %v12_v0 = vstv %s738_s6 }
   0x2   :  { %13 = vst [vmem:[#allocation2] sm:$0x1] %v12_v0 }
   0x3   :  { %14 = vsyncpa [#allocation4], 0 }
   0x4   :  { %15 = vsyncpa [#allocation6], 0  ;;  %s31_s28 = sshll.u32 %s733_s1, 4  ;;  %s661_s29 = smov [#allocation5]   ;;  %s32_s28 = int_to_ptr.hbm [resolvable:$true] %s31_s28 }
   0x5   :  { %s33_s30 = sshll.u32 %s661_s29, 4  ;;  %s21_s10 = sshll.u32 %s732_s0, 4  ;;  %s34_s30 = int_to_ptr.vmem [resolvable:$true] %s33_s30  ;;  %s22_s10 = int_to_ptr.hbm [resolvable:$true] %s21_s10 }
   0x6   :  { %s662_s11 = smov 128   ;;  %s663_s12 = smov 8  }
   0x7   :  { %39 = dma.hbm_to_vmem [thread:$0]  %s32_s28, 256, %s34_s30, [#allocation6], %s662_s11, %s662_s11, %s663_s12  }
   0x8   :  { %s664_s6 = smov [#allocation3]   ;;  %s46_s16 = sshll.u32 %s735_s3, 4  ;;  %s47_s16 = int_to_ptr.hbm [resolvable:$true] %s46_s16 }
   0x9   :  { %s23_s13 = sshll.u32 %s664_s6, 4  ;;  %s665_s1 = smov [#allocation7]   ;;  %s24_s13 = int_to_ptr.vmem [resolvable:$true] %s23_s13 }
   0xa   :  { %26 = dma.hbm_to_vmem [thread:$0]  %s22_s10, 128, %s24_s13, [#allocation4]  }
   0xb   :  { %s48_s17 = sshll.u32 %s665_s1, 4  ;;  %s49_s17 = int_to_ptr.vmem [resolvable:$true] %s48_s17 }
   0xc   :  { %54 = dma.hbm_to_vmem [thread:$0]  %s47_s16, 4096, %s49_s17, [#allocation6], %s662_s11, %s662_s11, %s663_s12  }
   0xd   :  { %657 = dma.done.wait [#allocation4], 128  }
   0xe   :  { %658 = vsyncadd [#allocation4], 4294967168 }
   0xf   :  { %659 = dma.done.wait [#allocation6], 4352  }
  0x10   :  { %660 = vsyncadd [#allocation6], 4294962944  ;;  %v409_v1 = vld [vmem:[#allocation5] sm:$0xf]  ;;  %v546_v2 = vld [vmem:[#allocation5 + $0x4] sm:$0xf0] }
  0x11   :  { %v545_v3 = vld [vmem:[#allocation5 + $0x4] sm:$0xf]  ;;  %v410_v4 = vor.u32 %v546_v2, %v409_v1  ;;  %v411_v5 = vld [vmem:[#allocation5 + $0x8] sm:$0xf0]  ;;  %v74_v6 = vld [vmem:[#allocation3] sm:$0xff]  ;;  %vm94_vm0 = vcmask 130048  }
  0x12   :  { %v475_v7 = vld [vmem:[#allocation7 + $0x70] sm:$0xf]  ;;  %v414_v8 = vor.u32 %v545_v3, %v411_v5  ;;  %v75_v9 = vpack.c.bf16 %v74_v6, %v74_v6  ;;  %v562_v10 = vld [vmem:[#allocation7 + $0x74] sm:$0xf0]  ;;  %v561_v15 = vld [vmem:[#allocation7 + $0x74] sm:$0xf] }
  0x13   :  { %v539_v11 = vld [vmem:[#allocation7 + $0xf0] sm:$0xf]  ;;  %v578_v12 = vld [vmem:[#allocation7 + $0xf4] sm:$0xf0]  ;;  %105 = vmatpush.bf16.msra.mxu0 %v410_v4  ;;  %v476_v13 = vor.u32 %v562_v10, %v475_v7  ;;  %v477_v16 = vld [vmem:[#allocation7 + $0x78] sm:$0xf0] }
  0x14   :  { %v540_v14 = vor.u32 %v578_v12, %v539_v11  ;;  %v577_v17 = vld [vmem:[#allocation7 + $0xf4] sm:$0xf]  ;;  %118 = vmatpush.bf16.msra.mxu1 %v414_v8  ;;  %v480_v18 = vor.u32 %v561_v15, %v477_v16  ;;  %v541_v19 = vld [vmem:[#allocation7 + $0xf8] sm:$0xf0]  ;;  %v467_v20 = vld [vmem:[#allocation7 + $0x60] sm:$0xf] }
  0x15   :  { %v560_v21 = vld [vmem:[#allocation7 + $0x64] sm:$0xf0]  ;;  %326 = vmatpush.bf16.msra.mxu2 %v476_v13  ;;  %v544_v22 = vor.u32 %v577_v17, %v541_v19  ;;  %v531_v24 = vld [vmem:[#allocation7 + $0xe0] sm:$0xf]  ;;  %v559_v26 = vld [vmem:[#allocation7 + $0x64] sm:$0xf] }
  0x16   :  { %339 = vmatpush.bf16.msra.mxu3 %v540_v14  ;;  %v468_v23 = vor.u32 %v560_v21, %v467_v20  ;;  %v576_v25 = vld [vmem:[#allocation7 + $0xe4] sm:$0xf0]  ;;  %415 = vmatmul.msk.bf16.vlgmr.msra.gmra.mxu0 %vm94_vm0, %v75_v9  ;;  %v469_v28 = vld [vmem:[#allocation7 + $0x68] sm:$0xf0]  ;;  %v575_v29 = vld [vmem:[#allocation7 + $0xe4] sm:$0xf] }
  0x17   :  { %v532_v27 = vor.u32 %v576_v25, %v531_v24  ;;  %v533_v30 = vld [vmem:[#allocation7 + $0xe8] sm:$0xf0]  ;;  %416 = vmatmul.msk.bf16.vlgmr.msra.gmra.mxu1 %vm94_vm0, %v75_v9  ;;  %352 = vmatpush.bf16.msrb.mxu0 %v480_v18  ;;  %v472_v31 = vor.u32 %v559_v26, %v469_v28  ;;  %v459_v32 = vld [vmem:[#allocation7 + $0x50] sm:$0xf]  ;;  %v558_v33 = vld [vmem:[#allocation7 + $0x54] sm:$0xf0] }
  0x18   :  { %v523_v34 = vld [vmem:[#allocation7 + $0xd0] sm:$0xf]  ;;  %365 = vmatpush.bf16.msrb.mxu1 %v544_v22  ;;  %v536_v35 = vor.u32 %v575_v29, %v533_v30  ;;  %v574_v36 = vld [vmem:[#allocation7 + $0xd4] sm:$0xf0]  ;;  %v557_v37 = vld [vmem:[#allocation7 + $0x54] sm:$0xf]  ;;  %v460_v39 = vor.u32 %v558_v33, %v459_v32 }
  0x19   :  { %v461_v38 = vld [vmem:[#allocation7 + $0x58] sm:$0xf0]  ;;  %327 = vmatpush.bf16.msra.mxu2 %v468_v23  ;;  %v524_v40 = vor.u32 %v574_v36, %v523_v34  ;;  %v573_v41 = vld [vmem:[#allocation7 + $0xd4] sm:$0xf]  ;;  %v451_v43 = vld [vmem:[#allocation7 + $0x40] sm:$0xf] }
  0x1a   :  { %340 = vmatpush.bf16.msra.mxu3 %v532_v27  ;;  %v525_v42 = vld [vmem:[#allocation7 + $0xd8] sm:$0xf0]  ;;  %v556_v44 = vld [vmem:[#allocation7 + $0x44] sm:$0xf0]  ;;  %v515_v45 = vld [vmem:[#allocation7 + $0xc0] sm:$0xf]  ;;  %v464_v47 = vor.u32 %v557_v37, %v461_v38 }
  0x1b   :  { %v572_v46 = vld [vmem:[#allocation7 + $0xc4] sm:$0xf0]  ;;  %353 = vmatpush.bf16.msrb.mxu0 %v472_v31  ;;  %v528_v48 = vor.u32 %v573_v41, %v525_v42  ;;  %v555_v49 = vld [vmem:[#allocation7 + $0x44] sm:$0xf]  ;;  %v453_v50 = vld [vmem:[#allocation7 + $0x48] sm:$0xf0]  ;;  %v452_v51 = vor.u32 %v556_v44, %v451_v43 }
  0x1c   :  { %366 = vmatpush.bf16.msrb.mxu1 %v536_v35  ;;  %v516_v52 = vor.u32 %v572_v46, %v515_v45  ;;  %v571_v53 = vld [vmem:[#allocation7 + $0xc4] sm:$0xf]  ;;  %v517_v54 = vld [vmem:[#allocation7 + $0xc8] sm:$0xf0]  ;;  %v443_v55 = vld [vmem:[#allocation7 + $0x30] sm:$0xf]  ;;  %v456_v59 = vor.u32 %v555_v49, %v453_v50 }
  0x1d   :  { %328 = vmatpush.bf16.msra.mxu2 %v460_v39  ;;  %v554_v56 = vld [vmem:[#allocation7 + $0x34] sm:$0xf0]  ;;  %v507_v57 = vld [vmem:[#allocation7 + $0xb0] sm:$0xf]  ;;  %v520_v60 = vor.u32 %v571_v53, %v517_v54  ;;  %v553_v61 = vld [vmem:[#allocation7 + $0x34] sm:$0xf] }
  0x1e   :  { %341 = vmatpush.bf16.msra.mxu3 %v524_v40  ;;  %v570_v58 = vld [vmem:[#allocation7 + $0xb4] sm:$0xf0]  ;;  %v445_v62 = vld [vmem:[#allocation7 + $0x38] sm:$0xf0]  ;;  %v569_v63 = vld [vmem:[#allocation7 + $0xb4] sm:$0xf]  ;;  %v444_v0 = vor.u32 %v554_v56, %v443_v55 }
  0x1f   :  { %354 = vmatpush.bf16.msrb.mxu0 %v464_v47  ;;  %v508_v1 = vor.u32 %v570_v58, %v507_v57  ;;  %v509_v2 = vld [vmem:[#allocation7 + $0xb8] sm:$0xf0]  ;;  %v435_v3 = vld [vmem:[#allocation7 + $0x20] sm:$0xf]  ;;  %v552_v4 = vld [vmem:[#allocation7 + $0x24] sm:$0xf0]  ;;  %v448_v7 = vor.u32 %v553_v61, %v445_v62 }
  0x20   :  { %367 = vmatpush.bf16.msrb.mxu1 %v528_v48  ;;  %v499_v5 = vld [vmem:[#allocation7 + $0xa0] sm:$0xf]  ;;  %v568_v6 = vld [vmem:[#allocation7 + $0xa4] sm:$0xf0]  ;;  %v512_v8 = vor.u32 %v569_v63, %v509_v2  ;;  %v551_v9 = vld [vmem:[#allocation7 + $0x24] sm:$0xf]  ;;  %v436_v11 = vor.u32 %v552_v4, %v435_v3 }
  0x21   :  { %329 = vmatpush.bf16.msra.mxu2 %v452_v51  ;;  %v437_v10 = vld [vmem:[#allocation7 + $0x28] sm:$0xf0]  ;;  %v500_v12 = vor.u32 %v568_v6, %v499_v5  ;;  %v567_v13 = vld [vmem:[#allocation7 + $0xa4] sm:$0xf]  ;;  %v427_v17 = vld [vmem:[#allocation7 + $0x10] sm:$0xf] }
  0x22   :  { %342 = vmatpush.bf16.msra.mxu3 %v516_v52  ;;  %v501_v14 = vld [vmem:[#allocation7 + $0xa8] sm:$0xf0]  ;;  %v440_v15 = vor.u32 %v551_v9, %v437_v10  ;;  %v550_v18 = vld [vmem:[#allocation7 + $0x14] sm:$0xf0]  ;;  %v491_v19 = vld [vmem:[#allocation7 + $0x90] sm:$0xf] }
  0x23   :  { %355 = vmatpush.bf16.msrb.mxu0 %v456_v59  ;;  %v504_v16 = vor.u32 %v567_v13, %v501_v14  ;;  %v428_v20 = vor.u32 %v550_v18, %v427_v17  ;;  %v566_v21 = vld [vmem:[#allocation7 + $0x94] sm:$0xf0]  ;;  %v549_v22 = vld [vmem:[#allocation7 + $0x14] sm:$0xf]  ;;  %v429_v23 = vld [vmem:[#allocation7 + $0x18] sm:$0xf0] }
  0x24   :  { %368 = vmatpush.bf16.msrb.mxu1 %v520_v60  ;;  %v492_v24 = vor.u32 %v566_v21, %v491_v19  ;;  %v432_v25 = vor.u32 %v549_v22, %v429_v23  ;;  %v565_v26 = vld [vmem:[#allocation7 + $0x94] sm:$0xf]  ;;  %v493_v27 = vld [vmem:[#allocation7 + $0x98] sm:$0xf0]  ;;  %v419_v29 = vld [vmem:[#allocation7] sm:$0xf] }
  0x25   :  { %330 = vmatpush.bf16.msra.mxu2 %v444_v0  ;;  %v496_v28 = vor.u32 %v565_v26, %v493_v27  ;;  %v548_v30 = vld [vmem:[#allocation7 + $0x4] sm:$0xf0]  ;;  %v483_v31 = vld [vmem:[#allocation7 + $0x80] sm:$0xf]  ;;  %v547_v34 = vld [vmem:[#allocation7 + $0x4] sm:$0xf] }
  0x26   :  { %343 = vmatpush.bf16.msra.mxu3 %v508_v1  ;;  %v420_v32 = vor.u32 %v548_v30, %v419_v29  ;;  %v564_v33 = vld [vmem:[#allocation7 + $0x84] sm:$0xf0]  ;;  %v421_v35 = vld [vmem:[#allocation7 + $0x8] sm:$0xf0]  ;;  %v563_v38 = vld [vmem:[#allocation7 + $0x84] sm:$0xf] }
  0x27   :  { %356 = vmatpush.bf16.msrb.mxu0 %v448_v7  ;;  %v484_v36 = vor.u32 %v564_v33, %v483_v31  ;;  %v424_v37 = vor.u32 %v547_v34, %v421_v35  ;;  %v485_v39 = vld [vmem:[#allocation7 + $0x88] sm:$0xf0]  ;;  %v78_v41 = vld [vmem:[%s734_s2] sm:$0x3]  ;;  %vm399_vm1 = vcmask 7168  }
  0x28   :  { %369 = vmatpush.bf16.msrb.mxu1 %v512_v8  ;;  %v488_v40 = vor.u32 %v563_v38, %v485_v39  ;;  %v80_v42 = vperm.slane %v78_v41, 0  ;;  %v81_v43 = vperm.slane %v78_v41, 1  ;;  %v160_v54 = vld [vmem:[%s736_s4] sm:$0x3] }
  0x29   :  { %331 = vmatpush.bf16.msra.mxu2 %v436_v11  ;;  %v163_v55 = vperm.slane %v160_v54, 1  ;;  %v380_v56 = vld [vmem:[%s737_s5] sm:$0x3]  ;;  %v162_v61 = vperm.slane %v160_v54, 0 }
  0x2a   :  { %344 = vmatpush.bf16.msra.mxu3 %v500_v12  ;;  %v381_v60 = vunpack.c.l.bf16 %v380_v56 }
  0x2b   :  { %357 = vmatpush.bf16.msrb.mxu0 %v440_v15 }
  0x2c   :  { %370 = vmatpush.bf16.msrb.mxu1 %v504_v16  ;;  %v383_v63 = vperm.slane %v381_v60, 0  ;;  %v384_v0 = vperm.slane %v381_v60, 2  ;;  %v584_v16 = vld [vmem:[#allocation2] ss:$0 sm:$0xff] }
  0x2d   :  { %332 = vmatpush.bf16.msra.mxu2 %v428_v20 }
  0x2e   :  { %345 = vmatpush.bf16.msra.mxu3 %v492_v24  ;;  %v387_v8 = vperm.slane %v383_v63, 0  ;;  %v388_v9 = vperm.slane %v384_v0, 0 }
  0x2f   :  { %358 = vmatpush.bf16.msrb.mxu0 %v432_v25 }
  0x30   :  { %371 = vmatpush.bf16.msrb.mxu1 %v496_v28 }
  0x31   :  { %333 = vmatpush.bf16.msra.mxu2 %v420_v32 }
  0x32   :  { %346 = vmatpush.bf16.msra.mxu3 %v484_v36 }
  0x33   :  { %359 = vmatpush.bf16.msrb.mxu0 %v424_v37 }
  0x34   :  { %372 = vmatpush.bf16.msrb.mxu1 %v488_v40 }
  0x93   :  { %v107_v44 = vpop.f32.mrf.mxu0 }
  0x94   :  { %v108_v45 = vadd.f32 %v107_v44, %v80_v42  ;;  %v120_v46 = vpop.f32.mrf.mxu1 }
  0x95   :  { %v121_v47 = vadd.f32 %v120_v46, %v81_v43 }
  0x96   :  { %v124_v48 = vmax.f32 %v108_v45, 0.0 }
  0x97   :  { %v125_v49 = vmax.f32 %v121_v47, 0.0 }
  0x98   :  { %v126_v50 = vpack.c.bf16 %v124_v48, %v124_v48 }
  0x99   :  { %v127_v51 = vpack.c.bf16 %v125_v49, %v125_v49 }
  0x9a   :  { %334 = vmatmul.bf16.vlgmr.msra.gmra.mxu2 %v126_v50  ;;  %360 = vmatmul.bf16.vlgmr.msrb.gmra.mxu0 %v126_v50 }
  0x9b   :  { %347 = vmatmul.bf16.vlgmr.msra.gmra.mxu3 %v127_v51  ;;  %373 = vmatmul.bf16.vlgmr.msrb.gmra.mxu1 %v127_v51  ;;  %v109_v52 = vpop.f32.mrf.mxu0 }
  0x9c   :  { %v122_v53 = vpop.f32.mrf.mxu1 }
 0x117   :  { %v361_v57 = vpop.f32.mrf.mxu0 }
 0x118   :  { %v362_v58 = vadd.f32 %v361_v57, %v163_v55  ;;  %v374_v59 = vpop.f32.mrf.mxu1 }
 0x11a   :  { %v375_v62 = vadd.f32 %v374_v59, %v362_v58 }
 0x11c   :  { %v379_v5 = vmax.f32 %v375_v62, 0.0 }
 0x11d   :  { %v335_v1 = vpop.f32.mrf.mxu2 }
 0x11e   :  { %v336_v2 = vadd.f32 %v335_v1, %v162_v61  ;;  %v348_v3 = vpop.f32.mrf.mxu3  ;;  %v390_v12 = vmul.f32 %v388_v9, %v379_v5 }
 0x11f   :  { %v363_v4 = vpop.f32.mrf.mxu0 }
 0x120   :  { %v349_v6 = vadd.f32 %v348_v3, %v336_v2  ;;  %v376_v7 = vpop.f32.mrf.mxu1 }
 0x122   :  { %v378_v10 = vmax.f32 %v349_v6, 0.0 }
 0x124   :  { %v389_v11 = vmul.f32 %v387_v8, %v378_v10 }
 0x125   :  { %v337_v13 = vpop.f32.mrf.mxu2 }
 0x126   :  { %v350_v14 = vpop.f32.mrf.mxu3  ;;  %v391_v15 = vadd.f32 %v390_v12, %v389_v11 }
 0x128   :  { %392 = vadd.xlane.f32.xlu0 %v391_v15 }
 0x19b   :  { %v393_v17 = vpop.xlane.xlu0 %392 }
 0x19c   :  { %v398_v18 = vadd.f32 %v584_v16, %v393_v17 }
 0x19e   :  { %400 = vst.msk [vmem:[%s739_s7] sm:$0xff] %vm399_vm1, %v398_v18 }
 0x19f   :  { %405 = vsyncpa [#allocation4], 1 }
 0x1a0   :  { %406 = vsyncpa [#allocation6], 1 }

</bundles_post_ra>
